<compile_context>
chip_gen: v6e
topology: v6e:2x2x1
jax: 0.10.0
libtpu: 0.0.40
codegen_flags: <defaults>
</compile_context>

<pallas_src>
import math

import jax
import jax.numpy as jnp
from jax.experimental import pallas as pl
from jax.experimental.pallas import tpu as pltpu


_LANE = 128  # lane width (last dim) on all TPU generations


def _round_up(x, m):
    return ((x + m - 1) // m) * m


def _sublane_multiple(dtype):
    # second-minor tiling requirement: 8 (4-byte), 16 (2-byte), 32 (1-byte)
    return {4: 8, 2: 16, 1: 32}[jnp.dtype(dtype).itemsize]


def _vmem_budget_bytes():
    """Generation-aware usable-VMEM budget (leave headroom for the compiler)."""
    try:
        cap = pltpu.get_tpu_info().vmem_capacity_bytes
    except Exception:
        cap = 64 * 1024 * 1024  # conservative fallback (v7x-sized)
    # ~96 MiB on v5e/v6e (128 MiB physical), ~48 MiB on v7x (64 MiB per TC).
    return int(cap * 0.75), cap


def _select_tile_m(row_counts, sub, cap, fits):
    """Pick TM minimizing padded rows + per-step overhead, subject to VMEM fit."""
    cands = []
    t = sub
    while t < cap:
        cands.append(t)
        t *= 2
    cands.append(cap)
    feasible = [t for t in cands if fits(t)]
    if not feasible:
        # Even the minimum row tile does not fit (huge K*N weight block).
        # TODO(synk): tile the weight over N/K with a pl.when-initialized f32
        # accumulator (P3) instead of shrinking row tiles further.
        return sub
    overhead_rows = 128  # ~0.35 us/grid-step expressed in row-equivalents

    def cost(t):
        tiles = sum(-(-m // t) for m in row_counts)
        return tiles * t + tiles * overhead_rows  # padded rows + step overhead

    return min(feasible, key=cost)


def _grouped_linear_kernel(type_ref, x_ref, w_ref, b_ref, o_ref):
    """One (TM, Kp) x (Kp, Np) tile: out = x @ W + b (f32 MXU accumulate)."""
    del type_ref  # consumed by the weight/bias index_maps only
    acc = jnp.dot(x_ref[...], w_ref[...], preferred_element_type=jnp.float32)
    o_ref[...] = (acc + b_ref[...].astype(jnp.float32)).astype(o_ref.dtype)


def init_hetero_linear_params(key, in_feats, out_feats, dtype=jnp.float32):
    """xavier_uniform weight (stored transposed: [in, out]) + torch-default bias."""
    params = {}
    for typ, typ_in in in_feats.items():
        key, kw, kb = jax.random.split(key, 3)
        bound_w = math.sqrt(6.0 / (typ_in + out_feats))        # xavier_uniform
        w = jax.random.uniform(kw, (typ_in, out_feats), dtype,
                               minval=-bound_w, maxval=bound_w)
        bound_b = 1.0 / math.sqrt(typ_in)                      # nn.Linear default
        b = jax.random.uniform(kb, (1, out_feats), dtype,
                               minval=-bound_b, maxval=bound_b)
        params[str(typ)] = (w, b)
    return params


def hetero_linear_forward(params, feat, *, compute_dtype=jnp.bfloat16):
    """Grouped per-type linear: a single pallas_call covering all node types.

    compute_dtype: dtype used for x/W/b on the MXU (default bf16: the kernel
    is HBM-bound at typical HeteroLinear sizes, so halving operand bytes is a
    direct wall-clock win). Accumulation is f32 and the OUTPUT is produced in
    the original input dtype, so f32 callers keep full accumulator precision.
    """
    types = list(feat.keys())
    if not types:
        return {}

    w0, _ = params[str(types[0])]
    out_feats = w0.shape[1]
    orig_dtype = feat[types[0]].dtype
    dtype = jnp.dtype(compute_dtype or orig_dtype)
    comp_bytes = dtype.itemsize
    out_bytes = jnp.dtype(orig_dtype).itemsize
    sub = max(_sublane_multiple(dtype), _sublane_multiple(orig_dtype))

    # Lane-dense output (unmasked stores); K padded only to the sublane
    # multiple (the x block spans the full K dim, so no x128 padding needed).
    n_pad = _round_up(out_feats, _LANE)
    k_pad = _round_up(max(params[str(t)][0].shape[0] for t in types), sub)

    vmem_budget, vmem_cap = _vmem_budget_bytes()
    max_tile_m = 1024 if vmem_cap >= 100 * 1024 * 1024 else 512  # smaller on v7x

    # Single-buffer the (type-resident) weight/bias blocks when their default
    # double-buffer would eat a big slice of VMEM (matters on v7x's 64 MiB);
    # consecutive same-type tiles revisit the same block so the only cost is
    # one exposed weight DMA per type boundary.
    w_block_bytes = (k_pad * n_pad + n_pad) * comp_bytes
    single_buffer_w = (2 * w_block_bytes) > (vmem_budget // 3)
    w_bufs = 1 if single_buffer_w else 2

    def _workset(t):
        x_tiles = 2 * t * k_pad * comp_bytes       # double-buffered x rows
        o_tiles = 2 * t * n_pad * out_bytes        # double-buffered out rows
        acc_tmp = t * n_pad * 4                    # f32 jnp.dot result temp
        return x_tiles + o_tiles + acc_tmp + w_bufs * w_block_bytes

    row_counts = [f.shape[0] for f in feat.values() if f.shape[0] > 0]
    max_rows = max((f.shape[0] for f in feat.values()), default=0)
    tm_cap = min(max_tile_m, _round_up(max(max_rows, 1), sub))
    tm = _select_tile_m(row_counts or [1], sub, tm_cap,
                        lambda t: _workset(t) <= vmem_budget)

    # Zero-padded weight/bias stacks: padded K rows / N cols contribute nothing.
    w_stack = jnp.stack([
        jnp.pad(params[str(t)][0].astype(dtype),
                ((0, k_pad - params[str(t)][0].shape[0]),
                 (0, n_pad - out_feats)))
        for t in types])                                    # (T, Kp, Np)
    b_stack = jnp.stack([
        jnp.pad(params[str(t)][1].astype(dtype),
                ((0, 0), (0, n_pad - out_feats)))
        for t in types])                                    # (T, 1, Np)

    # Concatenate row-padded inputs and build the per-tile type schedule.
    # (Contiguous-in-order layout => the per-tile row block is just arange,
    # so x/out use the affine index map (i, 0) with no SMEM table.)
    x_blocks, tile_type = [], []
    row_start = {}
    n_tiles = 0
    for ti, typ in enumerate(types):
        x = feat[typ]
        m_t = x.shape[0]
        row_start[typ] = n_tiles * tm
        t_tiles = -(-m_t // tm) if m_t > 0 else 0
        if t_tiles:
            x_blocks.append(jnp.pad(x.astype(dtype),
                                    ((0, t_tiles * tm - m_t),
                                     (0, k_pad - x.shape[1]))))
            tile_type += [ti] * t_tiles
            n_tiles += t_tiles

    if n_tiles == 0:  # every type had zero rows
        return {t: jnp.zeros((0, out_feats), orig_dtype) for t in types}

    x_cat = jnp.concatenate(x_blocks, axis=0)               # (n_tiles*tm, Kp)
    tile_type = jnp.asarray(tile_type, jnp.int32)
    total_rows = n_tiles * tm

    w_map = lambda i, t: (t[i], 0, 0)
    b_map = lambda i, t: (t[i], 0, 0)
    if single_buffer_w:
        w_spec = pl.BlockSpec((None, k_pad, n_pad), w_map,
                              pipeline_mode=pl.Buffered(1))
        b_spec = pl.BlockSpec((None, 1, n_pad), b_map,
                              pipeline_mode=pl.Buffered(1))
    else:
        w_spec = pl.BlockSpec((None, k_pad, n_pad), w_map)
        b_spec = pl.BlockSpec((None, 1, n_pad), b_map)

    grid_spec = pltpu.PrefetchScalarGridSpec(
        num_scalar_prefetch=1,
        grid=(n_tiles,),
        in_specs=[
            pl.BlockSpec((tm, k_pad), lambda i, t: (i, 0)),   # x (affine)
            w_spec,                                           # per-type weight
            b_spec,                                           # per-type bias
        ],
        out_specs=pl.BlockSpec((tm, n_pad), lambda i, t: (i, 0)),
    )
    cost = pl.CostEstimate(
        flops=2 * total_rows * k_pad * n_pad,
        transcendentals=0,
        bytes_accessed=(total_rows * k_pad * comp_bytes
                        + total_rows * n_pad * out_bytes
                        + len(types) * (k_pad + 1) * n_pad * comp_bytes),
    )

    out_full = pl.pallas_call(
        _grouped_linear_kernel,
        # Output stays in the caller's dtype: the f32 MXU accumulation is not
        # truncated to bf16 on the way out.
        out_shape=jax.ShapeDtypeStruct((total_rows, n_pad), orig_dtype),
        grid_spec=grid_spec,
        compiler_params=pltpu.CompilerParams(
            # Each grid step writes a distinct output row-block => parallel
            # (sharded across v7x's 2 TCs; neutral on single-TC chips).
            dimension_semantics=("parallel",),
            vmem_limit_bytes=vmem_budget,
        ),
        cost_estimate=cost,
    )(tile_type, x_cat, w_stack, b_stack)

    # NOTE: the pad/concat before and the per-type slice after the kernel are
    # an extra XLA-side HBM round trip; callers with static shapes should
    # cache x_cat / consume the padded slab directly when possible.
    out_feat = {}
    for typ in types:
        m_t = feat[typ].shape[0]
        if m_t == 0:
            out_feat[typ] = jnp.zeros((0, out_feats), orig_dtype)
        else:
            s = row_start[typ]
            out_feat[typ] = out_full[s:s + m_t, :out_feats]
    return out_feat
    # TODO(synk): bn/dropout branches are disabled by default in the module
    # (bn=False, dropout=0.0) and are not implemented here.


if __name__ == "__main__":
    key = jax.random.PRNGKey(0)

    # Heterogeneous input spec: three node types, different feature sizes,
    # one with a ragged (non-multiple-of-8) row count to exercise padding.
    in_feats = {"user": 16, "item": 32, "shop": 24}
    out_feats = 32

    key, kp = jax.random.split(key)
    params = init_hetero_linear_params(kp, in_feats, out_feats)

    key, ku, ki, ks = jax.random.split(key, 4)
    feat = {
        "user": jax.random.normal(ku, (8, 16), jnp.float32),
        "item": jax.random.normal(ki, (8, 32), jnp.float32),
        "shop": jax.random.normal(ks, (5, 24), jnp.float32),
    }

    # Default path: bf16 operands, f32 accumulation, f32 output.
    out_bf16 = hetero_linear_forward(params, feat)
    # Full-f32 path (tight-tolerance correctness check of the grouped kernel).
    out_f32 = hetero_linear_forward(params, feat, compute_dtype=jnp.float32)
    out_bf16 = jax.tree_util.tree_map(jax.block_until_ready, out_bf16)
    out_f32 = jax.tree_util.tree_map(jax.block_until_ready, out_f32)

    # Sanity check vs. plain-JAX reference.
    for typ in feat:
        w, b = params[typ]
        ref = feat[typ] @ w + b
        assert out_f32[typ].shape == (feat[typ].shape[0], out_feats)
        assert out_bf16[typ].shape == (feat[typ].shape[0], out_feats)
        assert out_f32[typ].dtype == feat[typ].dtype
        assert out_bf16[typ].dtype == feat[typ].dtype
        assert jnp.allclose(out_f32[typ], ref, atol=1e-5, rtol=1e-5), typ
        assert jnp.allclose(out_bf16[typ], ref, atol=5e-2, rtol=5e-2), typ

    print("KERNEL_OK")
</pallas_src>

<mosaic_0001>
module attributes {stable_mosaic.version = 11 : i64} {
  func.func @_grouped_linear_kernel(%arg0: i32, %arg1: memref<3xi32, #tpu.memory_space<smem>>, %arg2: memref<16x32xbf16, #tpu.memory_space<vmem>>, %arg3: memref<1x32x128xbf16, #tpu.memory_space<vmem>>, %arg4: memref<1x1x128xbf16, #tpu.memory_space<vmem>>, %arg5: memref<16x128xf32, #tpu.memory_space<vmem>>) attributes {dimension_semantics = [#tpu.dimension_semantics<parallel>], iteration_bounds = array<i64: 3>, scalar_prefetch = 1 : i64, scratch_operands = 0 : i64, tpu.core_type = #tpu.core_type<tc>, window_params = [{transform_indices = @transform_0, window_bounds = array<i64: 16, 32>}, {transform_indices = @transform_1, window_bounds = array<i64: 1, 32, 128>}, {transform_indices = @transform_2, window_bounds = array<i64: 1, 1, 128>}, {transform_indices = @transform_3, window_bounds = array<i64: 16, 128>}]} {
    %c0 = arith.constant 0 : index
    %c0_0 = arith.constant 0 : index
    %0 = vector.load %arg2[%c0, %c0_0] : memref<16x32xbf16, #tpu.memory_space<vmem>>, vector<16x32xbf16>
    %c0_1 = arith.constant 0 : index
    %c0_2 = arith.constant 0 : index
    %c0_3 = arith.constant 0 : index
    %1 = vector.load %arg3[%c0_1, %c0_2, %c0_3] : memref<1x32x128xbf16, #tpu.memory_space<vmem>>, vector<1x32x128xbf16>
    %2 = vector.shape_cast %1 : vector<1x32x128xbf16> to vector<32x128xbf16>
    %cst = arith.constant dense<0.000000e+00> : vector<16x128xf32>
    %3 = tpu.matmul %0, %2, %cst {dimension_numbers = #tpu.dot_dimension_numbers<[1], [0], [0], [1], [0, 0, 1, 1], [], []>} : vector<16x32xbf16>, vector<32x128xbf16>, vector<16x128xf32> -> vector<16x128xf32>
    %c0_4 = arith.constant 0 : index
    %c0_5 = arith.constant 0 : index
    %c0_6 = arith.constant 0 : index
    %4 = vector.load %arg4[%c0_4, %c0_5, %c0_6] : memref<1x1x128xbf16, #tpu.memory_space<vmem>>, vector<1x1x128xbf16>
    %5 = vector.shape_cast %4 : vector<1x1x128xbf16> to vector<1x128xbf16>
    %6 = arith.extf %5 : vector<1x128xbf16> to vector<1x128xf32>
    %7 = vector.broadcast %6 : vector<1x128xf32> to vector<16x128xf32>
    %8 = arith.addf %3, %7 : vector<16x128xf32>
    %c0_7 = arith.constant 0 : index
    %c0_8 = arith.constant 0 : index
    %9 = vector.load %arg5[%c0_7, %c0_8] : memref<16x128xf32, #tpu.memory_space<vmem>>, vector<16x128xf32>
    tpu.vector_store %arg5[%c0_7, %c0_8], %8 {strides = array<i32>} : memref<16x128xf32, #tpu.memory_space<vmem>>, vector<16x128xf32>,
    return
  }
  func.func @transform_0(%arg0: i32, %arg1: memref<3xi32, #tpu.memory_space<smem>>) -> (i32, i32) {
    %c0_i32 = arith.constant 0 : i32
    %c0_i32_0 = arith.constant 0 : i32
    return %arg0, %c0_i32 : i32, i32
  }
  func.func @transform_1(%arg0: i32, %arg1: memref<3xi32, #tpu.memory_space<smem>>) -> (i32, i32, i32) {
    %0 = arith.index_cast %arg0 : i32 to index
    %1 = memref.load %arg1[%0] : memref<3xi32, #tpu.memory_space<smem>>
    %c0_i32 = arith.constant 0 : i32
    %c0_i32_0 = arith.constant 0 : i32
    %c0_i32_1 = arith.constant 0 : i32
    return %1, %c0_i32, %c0_i32_0 : i32, i32, i32
  }
  func.func @transform_2(%arg0: i32, %arg1: memref<3xi32, #tpu.memory_space<smem>>) -> (i32, i32, i32) {
    %0 = arith.index_cast %arg0 : i32 to index
    %1 = memref.load %arg1[%0] : memref<3xi32, #tpu.memory_space<smem>>
    %c0_i32 = arith.constant 0 : i32
    %c0_i32_0 = arith.constant 0 : i32
    %c0_i32_1 = arith.constant 0 : i32
    return %1, %c0_i32, %c0_i32_0 : i32, i32, i32
  }
  func.func @transform_3(%arg0: i32, %arg1: memref<3xi32, #tpu.memory_space<smem>>) -> (i32, i32) {
    %c0_i32 = arith.constant 0 : i32
    %c0_i32_0 = arith.constant 0 : i32
    return %arg0, %c0_i32 : i32, i32
  }
}

</mosaic_0001>

<bundles_post_ra>
// kernel: tpu_custom_call.1
= control target key start
LH: loop header
LB: loop body
LE: loop exit
PB: predicated region body
PF: predicated region fallthrough
CT: control target
= control target key end

     0   :  { %s549_s15 = smov [#allocation3]   ;;  %s692_s0 = inlined_call_operand.hbm [shape: s32[3], index: 0, kind: input, shape index: {}]   ;;  %s693_s1 = inlined_call_operand.vmem [shape: bf16[48,32], index: 1, kind: input, shape index: {}]   ;;  %s694_s2 = inlined_call_operand.vmem [shape: bf16[3,32,128], index: 2, kind: input, shape index: {}]   ;;  %s695_s3 = inlined_call_operand.vmem [shape: bf16[3,1,128], index: 3, kind: input, shape index: {}]   ;;  %s696_s4 = inlined_call_operand.hbm [shape: f32[48,128], index: 4, kind: output, shape index: {}]  }
   0x1   :  { %10 = dma.hbm_to_smem %s692_s0, 16, %s549_s15, [#allocation2] }
   0x2   :  { %527 = dma.done.wait [#allocation2], 16 }
   0x3   :  { %528 = vsyncadd [#allocation2], 4294967280 }
   0x4   :  { %12 = sfence }
   0x5   :  { %13 = vsyncpa [#allocation5], 0 }
   0x6   :  { %15 = vsyncpa [#allocation5 + $0x1], 0  ;;  %s583_s18 = smov 0   ;;  %s585_s19 = smov 0  }
   0x7   :  { %s587_s20 = smov 0   ;;  %s589_s21 = smov 0  }
   0x8 LB: > { %s604_s0 = sadd.s32 4294967295, %s547_s21   ;;  %s399_s22 = sadd.s32 4294967294, %s547_s21   ;;  %s547_s21 = sphi %s589_s21, %s702_s21   ;;  %s543_s20 = sphi %s587_s20, %s701_s20   ;;  %s539_s19 = sphi %s585_s19, %s700_s19   ;;  %s535_s18 = sphi %s583_s18, %s699_s18  }
   0x9   : > { %s608_s23 = sadd.s32 1, %s547_s21   ;;  %s110_s24 = sadd.s32 1, %s543_s20 }
   0xa   : > { %s107_s25 = ssub.s32 %s547_s21, %s608_s23  ;;  %p120_p0 = scmp.ne.s32.totalorder %s543_s20, %s539_s19 }
   0xb   : > { %p108_p1 = scmp.eq.s32.totalorder %s107_s25, 0  ;;  %p121_p2 = scmp.eq.s32.totalorder %s604_s0, 2 }
   0xc   : > { %p126_p3 = scmp.ne.s32.totalorder %s539_s19, %s535_s18  ;;  %p127_p4 = scmp.eq.s32.totalorder %s399_s22, 2 }
   0xd   : > { %s619_s26 = scalar_select %p108_p1, %s543_s20, %s110_s24  }
   0xe   : > { %p621_p5 = por %p121_p2, %p120_p0  ;;  %p625_p6 = por %p127_p4, %p126_p3 }
   0xf   : > { %p402_p7 = scmp.ge.s32.totalorder %s547_s21, 1  ;;  %p172_p8 = scmp.lt.s32.totalorder %s547_s21, 4 }
  0x11   : > { %p173_p9 = pnand %p402_p7, %p172_p8 }
  0x12   : > { %s212_s29 = sld [smem:[#allocation3 + %s604_s0]] (!%p173_p9)  ;;  %s404_s30 = sshll.u32 (!%p173_p9), %s604_s0, 1 }
  0x13   : > { %176 = sbr.rel (%p173_p9) target bundleno = 250 (0xfa), region = 32  ;;  %p207_p10 = scmp.lt.s32.totalorder (!%p173_p9), %s404_s30, 5 }
  0x14   : > { %s219_s13 = sld [smem:[#allocation3 + %s604_s0]] (!%p173_p9)  ;;  %s203_s17 = sand.u32 (!%p173_p9), 1, %s539_s19  }
  0x15   : > { %s403_s22 = sshll.u32 (!%p173_p9), %s203_s17, 4  ;;  %s652_s7 = scalar_lea.sflag (!%p173_p9), [#allocation5], %s203_s17 }
  0x16   : > { %s205_s24 = scalar_lea.vmem (!%p173_p9), [#allocation4], %s403_s22 }
  0x17   : > { %s316_s25 = sshll.u32 (!%p173_p9), %s205_s24, 4  ;;  %s645_s25 = int_to_ptr.vmem [resolvable:$true] %s316_s25 }
  0x18   : > { %v550_v0 = vmov 0.0   ;;  %vm551_vm0 = vmmov 0   ;;  %s704_s30 = smov (!%p207_p10, %s404_s30), 5  ;;  %p213_p11 = scmp.lt.s32.totalorder %s212_s29, 2  ;;  %vm255_vm1 = vcmask 261120   ;;  %v234_v4 = vlaneseq }
  0x19   : > { %422 = vmatprep.subr.bf16.mxu0 %v550_v0  ;;  %426 = vmatprep.mubr.msk.bf16.mxu0 %vm551_vm0, %v550_v0  ;;  %s405_s5 = sshll.u32 %s704_s30, 2 }
  0x1a   : > { %s210_s8 = scalar_lea.vmem %s693_s1, %s405_s5  ;;  %s706_s29 = smov (!%p213_p11, %s212_s29), 2  ;;  %v235_v5 = vshrl.u32 %v234_v4, 7 }
  0x1b   : > { %s417_s9 = sshll.u32 %s706_s29, 4  ;;  %v476_v3 = vld [vmem:[%s210_s8] sm:$0xff]   ;;  %p220_p12 = scmp.lt.s32.totalorder %s219_s13, 2 }
  0x1c   : > { %s217_s12 = scalar_lea.vmem %s694_s2, %s417_s9  ;;  %v236_v8 = vsub.s32 0, %v235_v5  ;;  %s418_s29 = sshll.u32 %s604_s0, 8 }
  0x1d   : > { %v474_v1 = vld [vmem:[%s217_s12 + $0x8] sm:$0xff]   ;;  %v475_v2 = vld [vmem:[%s217_s12] sm:$0xff]   ;;  %s708_s13 = smov (!%p220_p12, %s219_s13), 2  ;;  %s650_s6 = scalar_lea.hbm %s696_s4, %s418_s29 }
  0x1e   : > { %423 = vmatpush3.bf16.msra.mxu0 %v474_v1  ;;  %s222_s16 = scalar_lea.vmem %s695_s3, %s708_s13  ;;  %s485_s8 = scalar_lea.vmem %s645_s25, 256 }
  0x1f   : > { %424 = vmatprep.subr.bf16.mxu0 %v550_v0  ;;  %v232_v6 = vld [vmem:[%s222_s16] sm:$0x1]  ;;  %p486_p13 = scmp.ne.s32.totalorder %s645_s25, %s485_s8  ;;  %s552_s0 = smov [#allocation4]  }
  0x20   : > { %v233_v7 = vunpack.c.l.bf16 %v232_v6  ;;  %s489_s9 = sshll.u32 %s552_s0, 4  ;;  %s490_s9 = int_to_ptr.vmem [resolvable:$false] %s489_s9 }
  0x21   : > { %p487_p0 = pnand %p486_p13, %p621_p5  ;;  %s491_s10 = scalar_lea.vmem %s490_s9, 512 }
  0x22   : > { %425 = vmatpush3.bf16.msra.mxu0 %v475_v2  ;;  %v237_v9 = vrot.slane %v233_v7, %v236_v8  ;;  %p492_p2 = scmp.lt.s32.totalorder %s645_s25, %s490_s9  ;;  %p493_p3 = scmp.lt.s32.totalorder %s491_s10, %s485_s8 }
  0x23   : > { %p488_p1 = pneg %p487_p0 }
  0x24   : > { %p494_p4 = por %p493_p3, %p492_p2 }
  0x25   : > { %427 = vmatmul.mubr.msk.bf16.vlgmr.msra.gmra.mxu0 %vm255_vm1, %v476_v3 }
  0x26   : > { %p495_p7 = pnand %p494_p4, %p488_p1 }
  0xe5   : > { %v293_v10 = vpop.f32.mrf.mxu0 }
  0xe6   : > { %v294_v11 = vadd.f32 %v293_v10, %v237_v9 }
  0xe7   : > { %v428_v12 = vpop.f32.mrf.mxu0 }
  0xe8   : > { %300 = vst [vmem:[%s205_s24] sm:$0xff] %v294_v11 }
  0xe9   : > { %v296_v13 = vpop.f32.mrf.mxu0 }
  0xea   : > { %v297_v14 = vadd.f32 %v296_v13, %v237_v9 }
  0xeb   : > { %v429_v15 = vpop.f32.mrf.mxu0 }
  0xec   : > { %301 = vst [vmem:[%s205_s24 + $0x8] sm:$0xff] %v297_v14 }
  0xed   : > { %498 = shalt.err (!%p495_p7)
}
  0xee   : > { %s499_s11 = scalar_lea.hbm %s650_s6, 256  ;;  %s503_s14 = scalar_lea.hbm %s696_s4, 768 }
  0xef   : > { %p500_p8 = scmp.ne.s32.totalorder %s650_s6, %s499_s11  ;;  %p504_p11 = scmp.lt.s32.totalorder %s650_s6, %s696_s4 }
  0xf0   : > { %p505_p12 = scmp.lt.s32.totalorder %s503_s14, %s499_s11 }
  0xf1   : > { %p501_p9 = pnand %p500_p8, %p621_p5 }
  0xf2   : > { %p506_p13 = por %p505_p12, %p504_p11 }
  0xf3   : > { %p502_p10 = pneg %p501_p9 }
  0xf5   : > { %p507_p0 = pnand %p506_p13, %p502_p10 }
  0xf7   : > { %510 = shalt.err (!%p507_p0)
}
  0xf8   : > { %s553_s17 = smov 128   ;;  %s554_s22 = smov 8  }
  0xf9   : > { %430 = dma.vmem_to_hbm [thread:$0]  (%p621_p5), %s645_s25, 256, %s650_s6, %s652_s7, %s553_s17, %s553_s17, %s554_s22  }
  0xfa PF: > { %p436_p1 = scmp.ge.s32.totalorder %s547_s21, 2  ;;  %s331_s24 = sand.u32 1, %s535_s18  }
  0xfb   : > { %s332_s29 = scalar_lea.sflag [#allocation5], %s331_s24 }
  0xfc   : > { %p433_p2 = pnand %p436_p1, %p625_p6 }
  0xfe   : > { %p434_p3 = pneg %p433_p2 }
 0x100   : > { %530 = dma.done.wait (%p434_p3), %s332_s29, 256  }
 0x101   : > { %532 = vsyncadd (%p434_p3), %s332_s29, 4294967040  ;;  %p18_p4 = scmp.ge.s32.totalorder %s608_s23, 5   ;;  %s699_s18 = smov %s539_s19 }
 0x102   : > { %s700_s19 = smov %s543_s20  ;;  %s701_s20 = smov %s619_s26 }
 0x103   : > { %s702_s21 = smov %s608_s23  ;;  %20 = sbr.rel (!%p18_p4) target bundleno = 8 (0x8), region = 73 }
 0x108   :  { %337 = vsyncpa [#allocation5], 1 }
 0x109   :  { %339 = vsyncpa [#allocation5 + $0x1], 1 }

</bundles_post_ra>
